<compile_context>
chip_gen: v5e
topology: v5e:2x2
jax: 0.10.0
libtpu: 0.0.40
codegen_flags: <defaults>
</compile_context>

<pallas_src>
import functools

import jax
import jax.numpy as jnp
from jax.experimental import pallas as pl
from jax.experimental.pallas import tpu as pltpu

EPS = 1e-5


def residual_block_kernel(x_ref, w1_ref, g1_ref, bt1_ref, alpha_ref,
                          w2_ref, g2_ref, bt2_ref, o_ref, pad_ref, *, channels):
    # x_ref   : (N, H, W*C)      f32   NHWC input with W,C merged into lanes
    # w*_ref  : (3, W*C, W*C)    bf16  per-dy banded im2col conv weights
    # g*_ref  : (1, W*C)         f32   BN gamma tiled per column
    # bt*_ref : (1, W*C)         f32   BN beta tiled per column
    # alpha_ref: (1,)            f32   PReLU alpha (SMEM scalar)
    # o_ref   : (N*H, W*C)       lane-dense output
    # pad_ref : (N, H+2, W*C)    bf16  row-padded scratch (column pad is folded
    #                                  into the banded weights)
    N, H, WC = x_ref.shape
    C = channels
    W = WC // C
    Hp = H + 2
    NH = N * H
    inv_cnt = 1.0 / (N * H * W)

    # Read the SMEM scalar once, before the heavy compute.
    alpha = alpha_ref[0]

    # ---- zero ONLY the two halo rows; interior written exactly once per conv
    zrow = jnp.zeros((N, 1, WC), pad_ref.dtype)
    pad_ref[:, 0:1, :] = zrow
    pad_ref[:, Hp - 1:Hp, :] = zrow
    pad_ref[:, 1:H + 1, :] = x_ref[...].astype(pad_ref.dtype)

    def conv3x3(w_ref):
        # Three accumulated MXU dots (one per kernel row dy); bf16 inputs,
        # f32 accumulation.  No im2col concatenate.
        acc = jnp.zeros((NH, WC), jnp.float32)
        for dy in range(3):
            lhs = pad_ref[:, dy:dy + H, :].reshape(NH, WC)
            acc = acc + jnp.dot(lhs, w_ref[dy],
                                preferred_element_type=jnp.float32)
        return acc

    def channel_group_sum(row_vec):
        # Sum each channel's W columns (stride C) and broadcast the result back
        # to every column using lane rotations (XLU); avoids lane-dim reshapes.
        acc = row_vec
        if (W & (W - 1)) == 0:            # power-of-two W: log-step doubling
            shift = C
            while shift < WC:
                acc = acc + pltpu.roll(acc, shift=shift, axis=1)
                shift *= 2
        else:
            for k in range(1, W):
                acc = acc + pltpu.roll(row_vec, shift=k * C, axis=1)
        return acc

    def batchnorm(y, g_ref, bt_ref):
        # Training-mode BN, biased batch statistics over (N, H, W), in f32.
        # Single pass: the two row-reductions issue back-to-back, then
        # var = E[y^2] - mean^2 and the affine folds into one scale/bias.
        s1 = jnp.sum(y, axis=0, keepdims=True)
        s2 = jnp.sum(y * y, axis=0, keepdims=True)
        mean = channel_group_sum(s1) * inv_cnt
        ex2 = channel_group_sum(s2) * inv_cnt
        var = ex2 - mean * mean
        scale = g_ref[...] * jax.lax.rsqrt(var + EPS)
        bias = bt_ref[...] - mean * scale
        return y * scale + bias

    # ---- conv1 -> bn1 -> prelu ----
    y1 = batchnorm(conv3x3(w1_ref), g1_ref, bt1_ref)
    y1 = jnp.where(y1 >= 0, y1, alpha * y1)

    # Reuse the same scratch as conv2's input (halo rows are still zero).
    pad_ref[:, 1:H + 1, :] = y1.reshape(N, H, WC).astype(pad_ref.dtype)

    # ---- conv2 -> bn2 -> residual add (lane-dense store) ----
    y2 = batchnorm(conv3x3(w2_ref), g2_ref, bt2_ref)
    out = y2 + x_ref[...].reshape(NH, WC)
    o_ref[...] = out.astype(o_ref.dtype)


def _banded_conv_matrix(w_hwio, W):
    """(3,3,Cin,Cout) HWIO weights -> (3, W*Cin, W*Cout) banded im2col blocks.

    Block dy holds, at (wp*Cin+ci, w*Cout+co), the tap w_hwio[dy, wp-w+1, ci, co]
    when |wp-w| <= 1 and 0 otherwise; the zeros outside the band implement the
    zero padding along W.
    """
    kh, kw, cin, cout = w_hwio.shape
    i = jnp.arange(W * cin)
    j = jnp.arange(W * cout)
    wp = (i // cin)[:, None]
    ci = (i % cin)[:, None]
    w_ = (j // cout)[None, :]
    co = (j % cout)[None, :]
    dx = wp - w_ + 1
    valid = (dx >= 0) & (dx < kw)
    dxc = jnp.clip(dx, 0, kw - 1)
    blocks = [jnp.where(valid, w_hwio[dy][dxc, ci, co], 0.0) for dy in range(kh)]
    return jnp.stack(blocks, axis=0)


def prepare_params(w1_hwio, g1, b1, alpha, w2_hwio, g2, b2, W):
    """One-time parameter preparation (hoisted out of the per-call hot path)."""
    w1b = _banded_conv_matrix(w1_hwio, W).astype(jnp.bfloat16)
    w2b = _banded_conv_matrix(w2_hwio, W).astype(jnp.bfloat16)
    g1c = jnp.tile(g1.astype(jnp.float32), W)[None, :]
    bt1c = jnp.tile(b1.astype(jnp.float32), W)[None, :]
    g2c = jnp.tile(g2.astype(jnp.float32), W)[None, :]
    bt2c = jnp.tile(b2.astype(jnp.float32), W)[None, :]
    alpha_s = jnp.reshape(alpha, (1,)).astype(jnp.float32)
    return (w1b, g1c, bt1c, alpha_s, w2b, g2c, bt2c)


@jax.jit
def residual_block_apply(x_nchw, params):
    w1b, g1c, bt1c, alpha_s, w2b, g2c, bt2c = params
    N, C, H, W = x_nchw.shape
    WC = W * C

    # NCHW (PyTorch) -> lane-dense (N, H, W*C) working layout.
    x2 = jnp.transpose(x_nchw, (0, 2, 3, 1)).reshape(N, H, WC)

    vmem = functools.partial(pl.BlockSpec, memory_space=pltpu.MemorySpace.VMEM)
    smem = functools.partial(pl.BlockSpec, memory_space=pltpu.MemorySpace.SMEM)

    out2 = pl.pallas_call(
        functools.partial(residual_block_kernel, channels=C),
        out_shape=jax.ShapeDtypeStruct((N * H, WC), x_nchw.dtype),
        in_specs=[vmem(), vmem(), vmem(), vmem(), smem(),
                  vmem(), vmem(), vmem()],
        out_specs=vmem(),
        scratch_shapes=[pltpu.VMEM((N, H + 2, WC), jnp.bfloat16)],
        compiler_params=pltpu.CompilerParams(
            vmem_limit_bytes=32 * 1024 * 1024),
    )(x2, w1b, g1c, bt1c, alpha_s, w2b, g2c, bt2c)

    out = out2.reshape(N, H, W, C)
    return jnp.transpose(out, (0, 3, 1, 2))  # back to NCHW


def residual_block(x_nchw, w1_hwio, g1, b1, alpha, w2_hwio, g2, b2):
    """Convenience wrapper: prepare params then apply (NCHW in/out)."""
    params = prepare_params(w1_hwio, g1, b1, alpha, w2_hwio, g2, b2,
                            x_nchw.shape[3])
    return residual_block_apply(x_nchw, params)


def residual_block_ref(x_nchw, w1_hwio, g1, b1, alpha, w2_hwio, g2, b2):
    """Pure-JAX f32 reference (training-mode BN), NCHW in/out."""
    x = jnp.transpose(x_nchw, (0, 2, 3, 1)).astype(jnp.float32)

    def conv(y, w):
        return jax.lax.conv_general_dilated(
            y, w, (1, 1), "SAME",
            dimension_numbers=("NHWC", "HWIO", "NHWC"),
            precision=jax.lax.Precision.HIGHEST)

    def bn(y, g, b):
        mean = y.mean(axis=(0, 1, 2), keepdims=True)
        var = jnp.square(y - mean).mean(axis=(0, 1, 2), keepdims=True)
        return (y - mean) / jnp.sqrt(var + EPS) * g + b

    y = conv(x, w1_hwio)
    y = bn(y, g1, b1)
    y = jnp.where(y >= 0, y, alpha * y)
    y = conv(y, w2_hwio)
    y = bn(y, g2, b2)
    y = y + x
    return jnp.transpose(y, (0, 3, 1, 2))


if __name__ == "__main__":
    planes, N, H, W = 8, 2, 16, 16

    key = jax.random.PRNGKey(0)
    kx, kw1, kw2 = jax.random.split(key, 3)

    x = jax.random.normal(kx, (N, planes, H, W), jnp.float32)   # NCHW like PyTorch

    # Conv weights, PyTorch-like uniform init, stored as HWIO.
    bound = 1.0 / (planes * 9) ** 0.5
    w1 = jax.random.uniform(kw1, (3, 3, planes, planes), jnp.float32, -bound, bound)
    w2 = jax.random.uniform(kw2, (3, 3, planes, planes), jnp.float32, -bound, bound)

    # BatchNorm affine params at PyTorch init values.
    g1 = jnp.ones((planes,), jnp.float32)
    b1 = jnp.zeros((planes,), jnp.float32)
    g2 = jnp.ones((planes,), jnp.float32)
    b2 = jnp.zeros((planes,), jnp.float32)

    # PReLU() default: single shared alpha = 0.25
    alpha = jnp.array(0.25, jnp.float32)

    # Params prepared once (banded weights / tiled affine), reused every call.
    params = jax.block_until_ready(
        prepare_params(w1, g1, b1, alpha, w2, g2, b2, W))

    out = residual_block_apply(x, params)
    out = jax.block_until_ready(out)

    ref = residual_block_ref(x, w1, g1, b1, alpha, w2, g2, b2)
    ref = jax.block_until_ready(ref)

    assert out.shape == (N, planes, H, W)
    # Tolerance accounts for bf16 MXU inputs (f32 accumulation / BN / residual);
    # a structural bug (wrong tap, padding, BN) would produce O(0.1..1) errors.
    max_err = float(jnp.max(jnp.abs(out - ref)))
    assert max_err < 3e-2, f"mismatch vs reference: max abs err = {max_err}"

    print("KERNEL_OK")
</pallas_src>

<mosaic_0001>
module attributes {stable_mosaic.version = 11 : i64} {
  func.func @residual_block_kernel(%arg0: memref<2x16x128xf32, #tpu.memory_space<vmem>>, %arg1: memref<3x128x128xbf16, #tpu.memory_space<vmem>>, %arg2: memref<1x128xf32, #tpu.memory_space<vmem>>, %arg3: memref<1x128xf32, #tpu.memory_space<vmem>>, %arg4: memref<1xf32, #tpu.memory_space<smem>>, %arg5: memref<3x128x128xbf16, #tpu.memory_space<vmem>>, %arg6: memref<1x128xf32, #tpu.memory_space<vmem>>, %arg7: memref<1x128xf32, #tpu.memory_space<vmem>>, %arg8: memref<32x128xf32, #tpu.memory_space<vmem>>, %arg9: memref<2x18x128xbf16, #tpu.memory_space<vmem>>) attributes {dimension_semantics = [], scalar_prefetch = 0 : i64, scratch_operands = 1 : i64, tpu.core_type = #tpu.core_type<tc>} {
    %c0 = arith.constant 0 : index
    %0 = memref.load %arg4[%c0] : memref<1xf32, #tpu.memory_space<smem>>
    %cst = arith.constant 0.000000e+00 : bf16
    %1 = vector.broadcast %cst : bf16 to vector<2x1x128xbf16>
    %c0_0 = arith.constant 0 : index
    %c0_1 = arith.constant 0 : index
    %c0_2 = arith.constant 0 : index
    %2 = vector.load %arg9[%c0_0, %c0_1, %c0_2] : memref<2x18x128xbf16, #tpu.memory_space<vmem>>, vector<2x1x128xbf16>
    tpu.vector_store %arg9[%c0_0, %c0_1, %c0_2], %1 {strides = array<i32>} : memref<2x18x128xbf16, #tpu.memory_space<vmem>>, vector<2x1x128xbf16>,
    %c0_3 = arith.constant 0 : index
    %c17 = arith.constant 17 : index
    %c0_4 = arith.constant 0 : index
    %3 = vector.load %arg9[%c0_3, %c17, %c0_4] : memref<2x18x128xbf16, #tpu.memory_space<vmem>>, vector<2x1x128xbf16>
    tpu.vector_store %arg9[%c0_3, %c17, %c0_4], %1 {strides = array<i32>} : memref<2x18x128xbf16, #tpu.memory_space<vmem>>, vector<2x1x128xbf16>,
    %c0_5 = arith.constant 0 : index
    %c0_6 = arith.constant 0 : index
    %c0_7 = arith.constant 0 : index
    %4 = vector.load %arg0[%c0_5, %c0_6, %c0_7] : memref<2x16x128xf32, #tpu.memory_space<vmem>>, vector<2x16x128xf32>
    %5 = arith.truncf %4 : vector<2x16x128xf32> to vector<2x16x128xbf16>
    %c0_8 = arith.constant 0 : index
    %c1 = arith.constant 1 : index
    %c0_9 = arith.constant 0 : index
    %6 = vector.load %arg9[%c0_8, %c1, %c0_9] : memref<2x18x128xbf16, #tpu.memory_space<vmem>>, vector<2x16x128xbf16>
    tpu.vector_store %arg9[%c0_8, %c1, %c0_9], %5 {strides = array<i32>} : memref<2x18x128xbf16, #tpu.memory_space<vmem>>, vector<2x16x128xbf16>,
    %cst_10 = arith.constant 0.000000e+00 : f32
    %7 = vector.broadcast %cst_10 : f32 to vector<32x128xf32>
    %c0_11 = arith.constant 0 : index
    %c0_12 = arith.constant 0 : index
    %c0_13 = arith.constant 0 : index
    %8 = vector.load %arg9[%c0_11, %c0_12, %c0_13] : memref<2x18x128xbf16, #tpu.memory_space<vmem>>, vector<2x16x128xbf16>
    %9 = vector.shape_cast %8 : vector<2x16x128xbf16> to vector<32x128xbf16>
    %c0_14 = arith.constant 0 : index
    %c0_15 = arith.constant 0 : index
    %c0_16 = arith.constant 0 : index
    %10 = vector.load %arg1[%c0_14, %c0_15, %c0_16] : memref<3x128x128xbf16, #tpu.memory_space<vmem>>, vector<1x128x128xbf16>
    %11 = vector.shape_cast %10 : vector<1x128x128xbf16> to vector<128x128xbf16>
    %cst_17 = arith.constant dense<0.000000e+00> : vector<32x128xf32>
    %12 = tpu.matmul %9, %11, %cst_17 {dimension_numbers = #tpu.dot_dimension_numbers<[1], [0], [0], [1], [0, 0, 1, 1], [], []>} : vector<32x128xbf16>, vector<128x128xbf16>, vector<32x128xf32> -> vector<32x128xf32>
    %13 = arith.addf %7, %12 : vector<32x128xf32>
    %c0_18 = arith.constant 0 : index
    %c1_19 = arith.constant 1 : index
    %c0_20 = arith.constant 0 : index
    %14 = vector.load %arg9[%c0_18, %c1_19, %c0_20] : memref<2x18x128xbf16, #tpu.memory_space<vmem>>, vector<2x16x128xbf16>
    %15 = vector.shape_cast %14 : vector<2x16x128xbf16> to vector<32x128xbf16>
    %c1_21 = arith.constant 1 : index
    %c0_22 = arith.constant 0 : index
    %c0_23 = arith.constant 0 : index
    %16 = vector.load %arg1[%c1_21, %c0_22, %c0_23] : memref<3x128x128xbf16, #tpu.memory_space<vmem>>, vector<1x128x128xbf16>
    %17 = vector.shape_cast %16 : vector<1x128x128xbf16> to vector<128x128xbf16>
    %cst_24 = arith.constant dense<0.000000e+00> : vector<32x128xf32>
    %18 = tpu.matmul %15, %17, %cst_24 {dimension_numbers = #tpu.dot_dimension_numbers<[1], [0], [0], [1], [0, 0, 1, 1], [], []>} : vector<32x128xbf16>, vector<128x128xbf16>, vector<32x128xf32> -> vector<32x128xf32>
    %19 = arith.addf %13, %18 : vector<32x128xf32>
    %c0_25 = arith.constant 0 : index
    %c2 = arith.constant 2 : index
    %c0_26 = arith.constant 0 : index
    %20 = vector.load %arg9[%c0_25, %c2, %c0_26] : memref<2x18x128xbf16, #tpu.memory_space<vmem>>, vector<2x16x128xbf16>
    %21 = vector.shape_cast %20 : vector<2x16x128xbf16> to vector<32x128xbf16>
    %c2_27 = arith.constant 2 : index
    %c0_28 = arith.constant 0 : index
    %c0_29 = arith.constant 0 : index
    %22 = vector.load %arg1[%c2_27, %c0_28, %c0_29] : memref<3x128x128xbf16, #tpu.memory_space<vmem>>, vector<1x128x128xbf16>
    %23 = vector.shape_cast %22 : vector<1x128x128xbf16> to vector<128x128xbf16>
    %cst_30 = arith.constant dense<0.000000e+00> : vector<32x128xf32>
    %24 = tpu.matmul %21, %23, %cst_30 {dimension_numbers = #tpu.dot_dimension_numbers<[1], [0], [0], [1], [0, 0, 1, 1], [], []>} : vector<32x128xbf16>, vector<128x128xbf16>, vector<32x128xf32> -> vector<32x128xf32>
    %25 = arith.addf %19, %24 : vector<32x128xf32>
    %cst_31 = arith.constant dense<0.000000e+00> : vector<128xf32>
    %26 = vector.multi_reduction <add>, %25, %cst_31 [0] : vector<32x128xf32> to vector<128xf32>
    %27 = vector.shape_cast %26 : vector<128xf32> to vector<1x128xf32>
    %28 = arith.mulf %25, %25 : vector<32x128xf32>
    %cst_32 = arith.constant dense<0.000000e+00> : vector<128xf32>
    %29 = vector.multi_reduction <add>, %28, %cst_32 [0] : vector<32x128xf32> to vector<128xf32>
    %30 = vector.shape_cast %29 : vector<128xf32> to vector<1x128xf32>
    %c8_i32 = arith.constant 8 : i32
    %31 = tpu.dynamic_rotate %27 by %c8_i32 dim 1 : vector<1x128xf32>, i32 -> vector<1x128xf32>
    %32 = arith.addf %27, %31 : vector<1x128xf32>
    %c16_i32 = arith.constant 16 : i32
    %33 = tpu.dynamic_rotate %32 by %c16_i32 dim 1 : vector<1x128xf32>, i32 -> vector<1x128xf32>
    %34 = arith.addf %32, %33 : vector<1x128xf32>
    %c32_i32 = arith.constant 32 : i32
    %35 = tpu.dynamic_rotate %34 by %c32_i32 dim 1 : vector<1x128xf32>, i32 -> vector<1x128xf32>
    %36 = arith.addf %34, %35 : vector<1x128xf32>
    %c64_i32 = arith.constant 64 : i32
    %37 = tpu.dynamic_rotate %36 by %c64_i32 dim 1 : vector<1x128xf32>, i32 -> vector<1x128xf32>
    %38 = arith.addf %36, %37 : vector<1x128xf32>
    %cst_33 = arith.constant 0.001953125 : f32
    %39 = vector.broadcast %cst_33 : f32 to vector<1x128xf32>
    %40 = arith.mulf %38, %39 : vector<1x128xf32>
    %c8_i32_34 = arith.constant 8 : i32
    %41 = tpu.dynamic_rotate %30 by %c8_i32_34 dim 1 : vector<1x128xf32>, i32 -> vector<1x128xf32>
    %42 = arith.addf %30, %41 : vector<1x128xf32>
    %c16_i32_35 = arith.constant 16 : i32
    %43 = tpu.dynamic_rotate %42 by %c16_i32_35 dim 1 : vector<1x128xf32>, i32 -> vector<1x128xf32>
    %44 = arith.addf %42, %43 : vector<1x128xf32>
    %c32_i32_36 = arith.constant 32 : i32
    %45 = tpu.dynamic_rotate %44 by %c32_i32_36 dim 1 : vector<1x128xf32>, i32 -> vector<1x128xf32>
    %46 = arith.addf %44, %45 : vector<1x128xf32>
    %c64_i32_37 = arith.constant 64 : i32
    %47 = tpu.dynamic_rotate %46 by %c64_i32_37 dim 1 : vector<1x128xf32>, i32 -> vector<1x128xf32>
    %48 = arith.addf %46, %47 : vector<1x128xf32>
    %cst_38 = arith.constant 0.001953125 : f32
    %49 = vector.broadcast %cst_38 : f32 to vector<1x128xf32>
    %50 = arith.mulf %48, %49 : vector<1x128xf32>
    %51 = arith.mulf %40, %40 : vector<1x128xf32>
    %52 = arith.subf %50, %51 : vector<1x128xf32>
    %c0_39 = arith.constant 0 : index
    %c0_40 = arith.constant 0 : index
    %53 = vector.load %arg2[%c0_39, %c0_40] : memref<1x128xf32, #tpu.memory_space<vmem>>, vector<1x128xf32>
    %cst_41 = arith.constant 9.99999974E-6 : f32
    %54 = vector.broadcast %cst_41 : f32 to vector<1x128xf32>
    %55 = arith.addf %52, %54 : vector<1x128xf32>
    %56 = math.rsqrt %55 : vector<1x128xf32>
    %57 = arith.mulf %53, %56 : vector<1x128xf32>
    %c0_42 = arith.constant 0 : index
    %c0_43 = arith.constant 0 : index
    %58 = vector.load %arg3[%c0_42, %c0_43] : memref<1x128xf32, #tpu.memory_space<vmem>>, vector<1x128xf32>
    %59 = arith.mulf %40, %57 : vector<1x128xf32>
    %60 = arith.subf %58, %59 : vector<1x128xf32>
    %61 = vector.broadcast %57 : vector<1x128xf32> to vector<32x128xf32>
    %62 = arith.mulf %25, %61 : vector<32x128xf32>
    %63 = vector.broadcast %60 : vector<1x128xf32> to vector<32x128xf32>
    %64 = arith.addf %62, %63 : vector<32x128xf32>
    %cst_44 = arith.constant 0.000000e+00 : f32
    %65 = vector.broadcast %cst_44 : f32 to vector<32x128xf32>
    %66 = arith.cmpf oge, %64, %65 : vector<32x128xf32>
    %67 = vector.broadcast %0 : f32 to vector<32x128xf32>
    %68 = arith.mulf %67, %64 : vector<32x128xf32>
    %69 = arith.select %66, %64, %68 : vector<32x128xi1>, vector<32x128xf32>
    %70 = vector.shape_cast %69 : vector<32x128xf32> to vector<2x16x128xf32>
    %71 = arith.truncf %70 : vector<2x16x128xf32> to vector<2x16x128xbf16>
    %c0_45 = arith.constant 0 : index
    %c1_46 = arith.constant 1 : index
    %c0_47 = arith.constant 0 : index
    %72 = vector.load %arg9[%c0_45, %c1_46, %c0_47] : memref<2x18x128xbf16, #tpu.memory_space<vmem>>, vector<2x16x128xbf16>
    tpu.vector_store %arg9[%c0_45, %c1_46, %c0_47], %71 {strides = array<i32>} : memref<2x18x128xbf16, #tpu.memory_space<vmem>>, vector<2x16x128xbf16>,
    %cst_48 = arith.constant 0.000000e+00 : f32
    %73 = vector.broadcast %cst_48 : f32 to vector<32x128xf32>
    %c0_49 = arith.constant 0 : index
    %c0_50 = arith.constant 0 : index
    %c0_51 = arith.constant 0 : index
    %74 = vector.load %arg9[%c0_49, %c0_50, %c0_51] : memref<2x18x128xbf16, #tpu.memory_space<vmem>>, vector<2x16x128xbf16>
    %75 = vector.shape_cast %74 : vector<2x16x128xbf16> to vector<32x128xbf16>
    %c0_52 = arith.constant 0 : index
    %c0_53 = arith.constant 0 : index
    %c0_54 = arith.constant 0 : index
    %76 = vector.load %arg5[%c0_52, %c0_53, %c0_54] : memref<3x128x128xbf16, #tpu.memory_space<vmem>>, vector<1x128x128xbf16>
    %77 = vector.shape_cast %76 : vector<1x128x128xbf16> to vector<128x128xbf16>
    %cst_55 = arith.constant dense<0.000000e+00> : vector<32x128xf32>
    %78 = tpu.matmul %75, %77, %cst_55 {dimension_numbers = #tpu.dot_dimension_numbers<[1], [0], [0], [1], [0, 0, 1, 1], [], []>} : vector<32x128xbf16>, vector<128x128xbf16>, vector<32x128xf32> -> vector<32x128xf32>
    %79 = arith.addf %73, %78 : vector<32x128xf32>
    %c0_56 = arith.constant 0 : index
    %c1_57 = arith.constant 1 : index
    %c0_58 = arith.constant 0 : index
    %80 = vector.load %arg9[%c0_56, %c1_57, %c0_58] : memref<2x18x128xbf16, #tpu.memory_space<vmem>>, vector<2x16x128xbf16>
    %81 = vector.shape_cast %80 : vector<2x16x128xbf16> to vector<32x128xbf16>
    %c1_59 = arith.constant 1 : index
    %c0_60 = arith.constant 0 : index
    %c0_61 = arith.constant 0 : index
    %82 = vector.load %arg5[%c1_59, %c0_60, %c0_61] : memref<3x128x128xbf16, #tpu.memory_space<vmem>>, vector<1x128x128xbf16>
    %83 = vector.shape_cast %82 : vector<1x128x128xbf16> to vector<128x128xbf16>
    %cst_62 = arith.constant dense<0.000000e+00> : vector<32x128xf32>
    %84 = tpu.matmul %81, %83, %cst_62 {dimension_numbers = #tpu.dot_dimension_numbers<[1], [0], [0], [1], [0, 0, 1, 1], [], []>} : vector<32x128xbf16>, vector<128x128xbf16>, vector<32x128xf32> -> vector<32x128xf32>
    %85 = arith.addf %79, %84 : vector<32x128xf32>
    %c0_63 = arith.constant 0 : index
    %c2_64 = arith.constant 2 : index
    %c0_65 = arith.constant 0 : index
    %86 = vector.load %arg9[%c0_63, %c2_64, %c0_65] : memref<2x18x128xbf16, #tpu.memory_space<vmem>>, vector<2x16x128xbf16>
    %87 = vector.shape_cast %86 : vector<2x16x128xbf16> to vector<32x128xbf16>
    %c2_66 = arith.constant 2 : index
    %c0_67 = arith.constant 0 : index
    %c0_68 = arith.constant 0 : index
    %88 = vector.load %arg5[%c2_66, %c0_67, %c0_68] : memref<3x128x128xbf16, #tpu.memory_space<vmem>>, vector<1x128x128xbf16>
    %89 = vector.shape_cast %88 : vector<1x128x128xbf16> to vector<128x128xbf16>
    %cst_69 = arith.constant dense<0.000000e+00> : vector<32x128xf32>
    %90 = tpu.matmul %87, %89, %cst_69 {dimension_numbers = #tpu.dot_dimension_numbers<[1], [0], [0], [1], [0, 0, 1, 1], [], []>} : vector<32x128xbf16>, vector<128x128xbf16>, vector<32x128xf32> -> vector<32x128xf32>
    %91 = arith.addf %85, %90 : vector<32x128xf32>
    %cst_70 = arith.constant dense<0.000000e+00> : vector<128xf32>
    %92 = vector.multi_reduction <add>, %91, %cst_70 [0] : vector<32x128xf32> to vector<128xf32>
    %93 = vector.shape_cast %92 : vector<128xf32> to vector<1x128xf32>
    %94 = arith.mulf %91, %91 : vector<32x128xf32>
    %cst_71 = arith.constant dense<0.000000e+00> : vector<128xf32>
    %95 = vector.multi_reduction <add>, %94, %cst_71 [0] : vector<32x128xf32> to vector<128xf32>
    %96 = vector.shape_cast %95 : vector<128xf32> to vector<1x128xf32>
    %c8_i32_72 = arith.constant 8 : i32
    %97 = tpu.dynamic_rotate %93 by %c8_i32_72 dim 1 : vector<1x128xf32>, i32 -> vector<1x128xf32>
    %98 = arith.addf %93, %97 : vector<1x128xf32>
    %c16_i32_73 = arith.constant 16 : i32
    %99 = tpu.dynamic_rotate %98 by %c16_i32_73 dim 1 : vector<1x128xf32>, i32 -> vector<1x128xf32>
    %100 = arith.addf %98, %99 : vector<1x128xf32>
    %c32_i32_74 = arith.constant 32 : i32
    %101 = tpu.dynamic_rotate %100 by %c32_i32_74 dim 1 : vector<1x128xf32>, i32 -> vector<1x128xf32>
    %102 = arith.addf %100, %101 : vector<1x128xf32>
    %c64_i32_75 = arith.constant 64 : i32
    %103 = tpu.dynamic_rotate %102 by %c64_i32_75 dim 1 : vector<1x128xf32>, i32 -> vector<1x128xf32>
    %104 = arith.addf %102, %103 : vector<1x128xf32>
    %cst_76 = arith.constant 0.001953125 : f32
    %105 = vector.broadcast %cst_76 : f32 to vector<1x128xf32>
    %106 = arith.mulf %104, %105 : vector<1x128xf32>
    %c8_i32_77 = arith.constant 8 : i32
    %107 = tpu.dynamic_rotate %96 by %c8_i32_77 dim 1 : vector<1x128xf32>, i32 -> vector<1x128xf32>
    %108 = arith.addf %96, %107 : vector<1x128xf32>
    %c16_i32_78 = arith.constant 16 : i32
    %109 = tpu.dynamic_rotate %108 by %c16_i32_78 dim 1 : vector<1x128xf32>, i32 -> vector<1x128xf32>
    %110 = arith.addf %108, %109 : vector<1x128xf32>
    %c32_i32_79 = arith.constant 32 : i32
    %111 = tpu.dynamic_rotate %110 by %c32_i32_79 dim 1 : vector<1x128xf32>, i32 -> vector<1x128xf32>
    %112 = arith.addf %110, %111 : vector<1x128xf32>
    %c64_i32_80 = arith.constant 64 : i32
    %113 = tpu.dynamic_rotate %112 by %c64_i32_80 dim 1 : vector<1x128xf32>, i32 -> vector<1x128xf32>
    %114 = arith.addf %112, %113 : vector<1x128xf32>
    %cst_81 = arith.constant 0.001953125 : f32
    %115 = vector.broadcast %cst_81 : f32 to vector<1x128xf32>
    %116 = arith.mulf %114, %115 : vector<1x128xf32>
    %117 = arith.mulf %106, %106 : vector<1x128xf32>
    %118 = arith.subf %116, %117 : vector<1x128xf32>
    %c0_82 = arith.constant 0 : index
    %c0_83 = arith.constant 0 : index
    %119 = vector.load %arg6[%c0_82, %c0_83] : memref<1x128xf32, #tpu.memory_space<vmem>>, vector<1x128xf32>
    %cst_84 = arith.constant 9.99999974E-6 : f32
    %120 = vector.broadcast %cst_84 : f32 to vector<1x128xf32>
    %121 = arith.addf %118, %120 : vector<1x128xf32>
    %122 = math.rsqrt %121 : vector<1x128xf32>
    %123 = arith.mulf %119, %122 : vector<1x128xf32>
    %c0_85 = arith.constant 0 : index
    %c0_86 = arith.constant 0 : index
    %124 = vector.load %arg7[%c0_85, %c0_86] : memref<1x128xf32, #tpu.memory_space<vmem>>, vector<1x128xf32>
    %125 = arith.mulf %106, %123 : vector<1x128xf32>
    %126 = arith.subf %124, %125 : vector<1x128xf32>
    %127 = vector.broadcast %123 : vector<1x128xf32> to vector<32x128xf32>
    %128 = arith.mulf %91, %127 : vector<32x128xf32>
    %129 = vector.broadcast %126 : vector<1x128xf32> to vector<32x128xf32>
    %130 = arith.addf %128, %129 : vector<32x128xf32>
    %c0_87 = arith.constant 0 : index
    %c0_88 = arith.constant 0 : index
    %c0_89 = arith.constant 0 : index
    %131 = vector.load %arg0[%c0_87, %c0_88, %c0_89] : memref<2x16x128xf32, #tpu.memory_space<vmem>>, vector<2x16x128xf32>
    %132 = vector.shape_cast %131 : vector<2x16x128xf32> to vector<32x128xf32>
    %133 = arith.addf %130, %132 : vector<32x128xf32>
    %c0_90 = arith.constant 0 : index
    %c0_91 = arith.constant 0 : index
    %134 = vector.load %arg8[%c0_90, %c0_91] : memref<32x128xf32, #tpu.memory_space<vmem>>, vector<32x128xf32>
    tpu.vector_store %arg8[%c0_90, %c0_91], %133 {strides = array<i32>} : memref<32x128xf32, #tpu.memory_space<vmem>>, vector<32x128xf32>,
    return
  }
}

</mosaic_0001>

<bundles_post_ra>
// kernel: residual_block_apply.1
= control target key start
LH: loop header
LB: loop body
LE: loop exit
PB: predicated region body
PF: predicated region fallthrough
CT: control target
= control target key end

     0   :  { %vm32_vm0 = vcmask 1040384   ;;  %vm33_vm1 = vsmask.f32 256  ;;  %v35_v8 = vld [vmem:[#allocation2] sm:$0x1]  ;;  %vm99_vm6 = vcmask 1043456   ;;  %s1885_s1 = inlined_call_operand.vmem [shape: bf16[3,128,128], index: 1, kind: input, shape index: {}]   ;;  %s1886_s0 = inlined_call_operand.vmem [shape: f32[2,16,128], index: 0, kind: input, shape index: {}]   ;;  %s1887_s5 = inlined_call_operand.vmem [shape: bf16[3,128,128], index: 5, kind: input, shape index: {}]   ;;  %s1888_s2 = inlined_call_operand.vmem [shape: f32[1,128], index: 2, kind: input, shape index: {}]   ;;  %s1889_s3 = inlined_call_operand.vmem [shape: f32[1,128], index: 3, kind: input, shape index: {}]   ;;  %s1890_s4 = inlined_call_operand.<no memory space> [shape: f32[1], index: 4, kind: input, shape index: {}]   ;;  %s1891_s6 = inlined_call_operand.vmem [shape: f32[1,128], index: 6, kind: input, shape index: {}]   ;;  %s1892_s7 = inlined_call_operand.vmem [shape: f32[1,128], index: 7, kind: input, shape index: {}]   ;;  %s1893_s8 = inlined_call_operand.vmem [shape: f32[32,128], index: 8, kind: output, shape index: {}]  }
   0x1   :  { %v1374_v0 = vld [vmem:[%s1885_s1 + $0x78] sm:$0xff]  ;;  %v1373_v3 = vld [vmem:[%s1885_s1 + $0x70] sm:$0xff]  ;;  %v1372_v6 = vld [vmem:[%s1885_s1 + $0x68] sm:$0xff]  ;;  %vm41_vm2 = vsmask.f32 7938  ;;  %vm365_vm9 = vcmask 1042432  }
   0x2   :  { %v1366_v1 = vld [vmem:[%s1885_s1 + $0x38] sm:$0xff]  ;;  %261 = vmatpush.bf16.msra.mxu0 %v1374_v0  ;;  %v1365_v4 = vld [vmem:[%s1885_s1 + $0x30] sm:$0xff]  ;;  %v1364_v7 = vld [vmem:[%s1885_s1 + $0x28] sm:$0xff]  ;;  %vm57_vm5 = vsmask.f32 4368  ;;  %vm366_vm10 = vcmask 1046532  }
   0x3   :  { %v1382_v2 = vld [vmem:[%s1885_s1 + $0xb8] sm:$0xff]  ;;  %340 = vmatpush.bf16.msra.mxu1 %v1366_v1  ;;  %v1381_v5 = vld [vmem:[%s1885_s1 + $0xb0] sm:$0xff]  ;;  %v1380_v9 = vld [vmem:[%s1885_s1 + $0xa8] sm:$0xff]  ;;  %vm137_vm11 = vsmask.f32 3328  ;;  %s1436_s17 = smov 16  }
   0x4   :  { %455 = vmatpush.bf16.msra.mxu2 %v1382_v2  ;;  %v1371_v10 = vld [vmem:[%s1885_s1 + $0x60] sm:$0xff]  ;;  %vm1519_vm3 = vmand %vm32_vm0, %vm33_vm1  ;;  %v43_v13 = vld [vmem:[#allocation2 + $0x8] sm:$0x1]  ;;  %vm138_vm12 = vsmask.f32 7440  ;;  %s1437_s18 = smov 32  }
   0x5   :  { %v1363_v11 = vld [vmem:[%s1885_s1 + $0x20] sm:$0xff]  ;;  %v36_v16 = vsel %vm1519_vm3, 0, %v35_v8  ;;  %vm1533_vm4 = vmand %vm32_vm0, %vm41_vm2  ;;  %v50_v18 = vld [vmem:[%s1886_s0 + $0x8] sm:$0xff]  ;;  %s1438_s19 = smov 64  }
   0x6   :  { %262 = vmatpush.bf16.msra.mxu0 %v1373_v3  ;;  %v49_v14 = vld [vmem:[%s1886_s0] sm:$0xff]  ;;  %v38_v20 = vld [vmem:[#allocation2 + $0xc] sm:$0x1]  ;;  %37 = vst [vmem:[#allocation2] sm:$0x1] %v36_v16  ;;  %v44_v21 = vsel %vm1533_vm4, 0, %v43_v13  ;;  %v54_v22 = vpack.c.bf16 %v50_v18, %v50_v18  ;;  %vm1560_vm7 = vmor %vm33_vm1, %vm57_vm5 }
   0x7   :  { %341 = vmatpush.bf16.msra.mxu1 %v1365_v4  ;;  %v1379_v15 = vld [vmem:[%s1885_s1 + $0xa0] sm:$0xff]  ;;  %v53_v19 = vpack.c.bf16 %v49_v14, %v49_v14  ;;  %v39_v23 = vsel %vm1519_vm3, 0, %v38_v20  ;;  %v46_v24 = vld [vmem:[#allocation2 + $0x14] sm:$0x1]  ;;  %45 = vst [vmem:[#allocation2 + $0x8] sm:$0x1] %v44_v21  ;;  %vm1569_vm8 = vmand %vm99_vm6, %vm41_vm2 }
   0x8   :  { %456 = vmatpush.bf16.msra.mxu2 %v1381_v5  ;;  %v47_v27 = vsel %vm1533_vm4, 0, %v46_v24  ;;  %v51_v28 = vld [vmem:[%s1886_s0 + $0x10] sm:$0xff]  ;;  %v68_v29 = vshrl.u32 %v54_v22, 16  ;;  %v71_v30 = vshll.u32 %v54_v22, 16  ;;  %40 = vst [vmem:[#allocation2 + $0xc] sm:$0x1] %v39_v23  ;;  %vm1618_vm13 = vmor %vm365_vm9, %vm366_vm10 }
   0x9   :  { %v60_v25 = vshrl.u32 %v53_v19, 16  ;;  %v63_v26 = vshll.u32 %v53_v19, 16  ;;  %v52_v31 = vld [vmem:[%s1886_s0 + $0x18] sm:$0xff]  ;;  %v55_v32 = vpack.c.bf16 %v51_v28, %v51_v28  ;;  %48 = vst [vmem:[#allocation2 + $0x14] sm:$0x1] %v47_v27  ;;  %v1369_v52 = vld [vmem:[%s1885_s1 + $0x50] sm:$0xff]  ;;  %vm1626_vm14 = vmor %vm137_vm11, %vm138_vm12 }
   0xa   :  { %263 = vmatpush.bf16.msra.mxu0 %v1372_v6  ;;  %v56_v34 = vpack.c.bf16 %v52_v31, %v52_v31  ;;  %v1370_v35 = vld [vmem:[%s1885_s1 + $0x58] sm:$0xff]  ;;  %v70_v38 = vrot.slane %v68_v29, 7  ;;  %v1361_v53 = vld [vmem:[%s1885_s1 + $0x10] sm:$0xff]  ;;  %v1368_v4 = vld [vmem:[%s1885_s1 + $0x48] sm:$0xff] }
   0xb   :  { %342 = vmatpush.bf16.msra.mxu1 %v1364_v7  ;;  %v62_v33 = vrot.slane %v60_v25, 7  ;;  %v1362_v36 = vld [vmem:[%s1885_s1 + $0x18] sm:$0xff]  ;;  %v77_v39 = vshrl.u32 %v55_v32, 16  ;;  %v80_v40 = vshll.u32 %v55_v32, 16  ;;  %v1377_v59 = vld [vmem:[%s1885_s1 + $0x90] sm:$0xff]  ;;  %v1360_v5 = vld [vmem:[%s1885_s1 + $0x8] sm:$0xff] }
   0xc   :  { %457 = vmatpush.bf16.msra.mxu2 %v1380_v9  ;;  %v1378_v41 = vld [vmem:[%s1885_s1 + $0x98] sm:$0xff]  ;;  %v85_v45 = vshrl.u32 %v56_v34, 16  ;;  %v88_v46 = vshll.u32 %v56_v34, 16  ;;  %v73_v47 = vor.u32 %v71_v30, %v70_v38  ;;  %v75_v48 = vrot.slane %v70_v38, 4  ;;  %v1376_v6 = vld [vmem:[%s1885_s1 + $0x88] sm:$0xff]  ;;  %v1367_v7 = vld [vmem:[%s1885_s1 + $0x40] sm:$0xff] }
   0xd   :  { %v65_v42 = vor.u32 %v63_v26, %v62_v33  ;;  %v66_v43 = vrot.slane %v62_v33, 4  ;;  %v79_v49 = vrot.slane %v77_v39, 7  ;;  %v101_v50 = vld [vmem:[#allocation2] sm:$0xf] }
   0xe   :  { %264 = vmatpush.bf16.msra.mxu0 %v1371_v10  ;;  %v87_v51 = vrot.slane %v85_v45, 7  ;;  %v105_v56 = vld [vmem:[#allocation2 + $0x8] sm:$0x1]  ;;  %v1359_v8 = vld [vmem:[%s1885_s1] sm:$0xff] }
   0xf   :  { %343 = vmatpush.bf16.msra.mxu1 %v1363_v11  ;;  %v74_v54 = vsel %vm1560_vm7, %v66_v43, %v73_v47  ;;  %v102_v55 = vsel %vm1569_vm8, %v65_v42, %v101_v50  ;;  %v82_v57 = vor.u32 %v80_v40, %v79_v49  ;;  %v83_v58 = vrot.slane %v79_v49, 4  ;;  %v108_v63 = vld [vmem:[#allocation2 + $0xc] sm:$0xf]  ;;  %v1375_v11 = vld [vmem:[%s1885_s1 + $0x80] sm:$0xff]  ;;  %s1435_s1 = smov 8  }
  0x10   :  { %458 = vmatpush.bf16.msra.mxu2 %v1379_v15  ;;  %103 = vst [vmem:[#allocation2] sm:$0xf] %v102_v55  ;;  %v106_v60 = vsel %vm1519_vm3, %v75_v48, %v105_v56  ;;  %v90_v61 = vor.u32 %v88_v46, %v87_v51  ;;  %v92_v62 = vrot.slane %v87_v51, 4  ;;  %v112_v1 = vld [vmem:[#allocation2 + $0x14] sm:$0x1] }
  0x11   :  { %104 = vst [vmem:[#allocation2 + $0x4] sm:$0xf] %v74_v54  ;;  %v109_v0 = vsel %vm1569_vm8, %v82_v57, %v108_v63 }
  0x12   :  { %265 = vmatpush.bf16.msra.mxu0 %v1370_v35  ;;  %107 = vst [vmem:[#allocation2 + $0x8] sm:$0x1] %v106_v60  ;;  %v91_v2 = vsel %vm1560_vm7, %v83_v58, %v90_v61  ;;  %v113_v3 = vsel %vm1519_vm3, %v92_v62, %v112_v1 }
  0x13   :  { %344 = vmatpush.bf16.msra.mxu1 %v1362_v36  ;;  %110 = vst [vmem:[#allocation2 + $0xc] sm:$0xf] %v109_v0 }
  0x14   :  { %459 = vmatpush.bf16.msra.mxu2 %v1378_v41  ;;  %111 = vst [vmem:[#allocation2 + $0x10] sm:$0xf] %v91_v2 }
  0x15   :  { %114 = vst [vmem:[#allocation2 + $0x14] sm:$0x1] %v113_v3 }
  0x16   :  { %266 = vmatpush.bf16.msra.mxu0 %v1369_v52 }
  0x17   :  { %345 = vmatpush.bf16.msra.mxu1 %v1361_v53  ;;  %v1609_v9 = vld [vmem:[#allocation2] sm:$0xf] }
  0x18   :  { %460 = vmatpush.bf16.msra.mxu2 %v1377_v59  ;;  %v359_v10 = vld [vmem:[#allocation2] sm:$0xe]  ;;  %v116_v13 = vld [vmem:[#allocation2 + $0x4] sm:$0xf]  ;;  %v141_v14 = vshrl.u32 %v1609_v9, 16  ;;  %v144_v15 = vshll.u32 %v1609_v9, 16 }
  0x19   :  { %v1169_v17 = vrot.slane %v359_v10, 9  ;;  %v135_v18 = vld [vmem:[#allocation2 + $0x8] sm:$0x1]  ;;  %v150_v19 = vshll.u32 %v116_v13, 16  ;;  %v154_v20 = vshrl.u32 %v116_v13, 16  ;;  %v1357_v21 = vld [vmem:[#allocation2] sm:$0xff] }
  0x1a   :  { %267 = vmatpush.bf16.msra.mxu0 %v1368_v4  ;;  %v370_v22 = vrot.slane %v116_v13, 5  ;;  %v143_v23 = vrot.slane %v141_v14, 4  ;;  %v146_v24 = vrot.slane %v144_v15, 5  ;;  %v160_v25 = vshll.u32 %v135_v18, 16  ;;  %v117_v27 = vld [vmem:[#allocation2 + $0xc] sm:$0xf] }
  0x1b   :  { %346 = vmatpush.bf16.msra.mxu1 %v1360_v5  ;;  %v373_v26 = vrot.slane %v135_v18, 5  ;;  %v152_v28 = vrot.slane %v150_v19, 5  ;;  %v156_v29 = vrot.slane %v154_v20, 4  ;;  %v118_v32 = vld [vmem:[#allocation2 + $0x10] sm:$0xf]  ;;  %v165_v36 = vshrl.u32 %v117_v27, 16 }
  0x1c   :  { %461 = vmatpush.bf16.msra.mxu2 %v1376_v6  ;;  %v371_v30 = vsel %vm1618_vm13, %v1169_v17, %v370_v22  ;;  %v372_v31 = vrot.slane %v370_v22, 4  ;;  %v147_v33 = vor.u32 %v146_v24, %v143_v23  ;;  %v162_v34 = vrot.slane %v160_v25, 5  ;;  %v136_v48 = vld [vmem:[#allocation2 + $0x14] sm:$0x1]  ;;  %v360_v55 = vld [vmem:[#allocation2 + $0xc] sm:$0xe] }
  0x1d   :  { %v399_v35 = vunpack.c.l.b16 %v371_v30  ;;  %v157_v39 = vor.u32 %v156_v29, %v152_v28  ;;  %v168_v41 = vshll.u32 %v117_v27, 16  ;;  %v174_v42 = vshll.u32 %v118_v32, 16 }
  0x1e   :  { %268 = vmatpush.bf16.msra.mxu0 %v1367_v7  ;;  %v374_v40 = vsel %vm1618_vm13, %v372_v31, %v373_v26  ;;  %v148_v43 = vrot.slane %v147_v33, 4  ;;  %v178_v46 = vshrl.u32 %v118_v32, 16  ;;  %v167_v49 = vrot.slane %v165_v36, 4 }
  0x1f   :  { %347 = vmatpush.bf16.msra.mxu1 %v1359_v8  ;;  %v400_v45 = vunpack.c.l.b16 %v374_v40  ;;  %v158_v47 = vrot.slane %v157_v39, 4  ;;  %v170_v50 = vrot.slane %v168_v41, 5  ;;  %v176_v51 = vrot.slane %v174_v42, 5  ;;  %v1358_v8 = vld [vmem:[#allocation2 + $0xc] sm:$0xff] }
  0x20   :  { %462 = vmatpush.bf16.msra.mxu2 %v1375_v11  ;;  %v153_v52 = vsel %vm1626_vm14, %v148_v43, %v152_v28  ;;  %v180_v54 = vrot.slane %v178_v46, 4  ;;  %v184_v59 = vshll.u32 %v136_v48, 16  ;;  %v377_v60 = vrot.slane %v118_v32, 5 }
  0x21   :  { %v403_v53 = vpack.c.b16 %v400_v45, %v399_v35  ;;  %v163_v56 = vsel %vm1626_vm14, %v158_v47, %v162_v34  ;;  %v205_v57 = vunpack.c.l.b16 %v153_v52  ;;  %v171_v61 = vor.u32 %v170_v50, %v167_v49 }
  0x22   :  { %348 = vmatmul.bf16.vlgmr.msra.gmra.mxu1 %v1357_v21  ;;  %v206_v58 = vunpack.c.l.b16 %v163_v56  ;;  %v181_v62 = vor.u32 %v180_v54, %v176_v51  ;;  %v1170_v63 = vrot.slane %v360_v55, 9  ;;  %v380_v0 = vrot.slane %v136_v48, 5 }
  0x23   :  { %463 = vmatmul.bf16.vlgmr.msra.gmra.mxu2 %v403_v53  ;;  %v379_v2 = vrot.slane %v377_v60, 4  ;;  %v186_v3 = vrot.slane %v184_v59, 5  ;;  %v172_v4 = vrot.slane %v171_v61, 4 }
  0x24   :  { %v209_v1 = vpack.c.b16 %v206_v58, %v205_v57  ;;  %v182_v5 = vrot.slane %v181_v62, 4  ;;  %v378_v6 = vsel %vm1618_vm13, %v1170_v63, %v377_v60 }
  0x25   :  { %v381_v7 = vsel %vm1618_vm13, %v379_v2, %v380_v0  ;;  %v401_v10 = vunpack.c.l.b16 %v378_v6  ;;  %v177_v13 = vsel %vm1626_vm14, %v172_v4, %v176_v51 }
  0x26   :  { %269 = vmatmul.bf16.vlgmr.msra.gmra.mxu0 %v209_v1  ;;  %v402_v11 = vunpack.c.l.b16 %v381_v7  ;;  %v187_v14 = vsel %vm1626_vm14, %v182_v5, %v186_v3  ;;  %v207_v15 = vunpack.c.l.b16 %v177_v13 }
  0x27   :  { %v208_v17 = vunpack.c.l.b16 %v187_v14 }
  0x28   :  { %v404_v18 = vpack.c.b16 %v402_v11, %v401_v10 }
  0x29   :  { %v210_v19 = vpack.c.b16 %v208_v17, %v207_v15 }
  0x32   :  { %353 = vmatmul.bf16.gmra.mxu1 %v1358_v8 }
  0x33   :  { %468 = vmatmul.bf16.gmra.mxu2 %v404_v18 }
  0x36   :  { %274 = vmatmul.bf16.gmra.mxu0 %v210_v19  ;;  %v1392_v19 = vld [vmem:[%s1887_s5 + $0x38] sm:$0xff] }
  0x37   :  { %850 = vmatpush.bf16.msrb.mxu0 %v1392_v19  ;;  %1409 = vmatpush.bf16.msrb.mxu2 %v1392_v19 }
  0x9f   :  { %v349_v20 = vpop.f32.mrf.mxu1 }
  0xa3   :  { %v270_v21 = vpop.f32.mrf.mxu0 }
  0xa4   :  { %v350_v28 = vadd.f32 %v349_v20, %v270_v21 }
  0xa6   :  { %v464_v22 = vpop.f32.mrf.mxu2 }
  0xa7   :  { %v351_v23 = vpop.f32.mrf.mxu1  ;;  %v1646_v33 = vadd.f32 %v464_v22, %v350_v28  ;;  %v1390_v28 = vld [vmem:[%s1887_s5 + $0x28] sm:$0xff] }
  0xa9   :  { %v487_v40 = vmul.f32 %v1646_v33, %v1646_v33 }
  0xab   :  { %v272_v24 = vpop.f32.mrf.mxu0 }
  0xac   :  { %v352_v29 = vadd.f32 %v351_v23, %v272_v24  ;;  %v1391_v24 = vld [vmem:[%s1887_s5 + $0x30] sm:$0xff] }
  0xad   :  { %851 = vmatpush.bf16.msrb.mxu0 %v1391_v24  ;;  %1410 = vmatpush.bf16.msrb.mxu2 %v1391_v24 }
  0xae   :  { %v466_v25 = vpop.f32.mrf.mxu2 }
  0xaf   :  { %v354_v26 = vpop.f32.mrf.mxu1  ;;  %v1644_v32 = vadd.f32 %v466_v25, %v352_v29  ;;  %v1400_v29 = vld [vmem:[%s1887_s5 + $0x78] sm:$0xff] }
  0xb0   :  { %771 = vmatpush.bf16.msra.mxu3 %v1400_v29 }
  0xb1   :  { %v488_v36 = vmul.f32 %v1644_v32, %v1644_v32  ;;  %v478_v41 = vadd.f32 %v1644_v32, %v1646_v33  ;;  %852 = vmatpush.bf16.msrb.mxu0 %v1390_v28  ;;  %1411 = vmatpush.bf16.msrb.mxu2 %v1390_v28 }
  0xb3   :  { %v275_v27 = vpop.f32.mrf.mxu0  ;;  %v491_v46 = vadd.f32 %v488_v36, %v487_v40  ;;  %v1399_v36 = vld [vmem:[%s1887_s5 + $0x70] sm:$0xff]  ;;  %v1388_v40 = vld [vmem:[%s1887_s5 + $0x18] sm:$0xff] }
  0xb4   :  { %v355_v30 = vadd.f32 %v354_v26, %v275_v27  ;;  %v1685_v27 = vld [vmem:[%s1887_s5 + $0xb8] sm:$0xff]  ;;  %772 = vmatpush.bf16.msra.mxu3 %v1399_v36 }
  0xb5   :  { %962 = vmatpush.bf16.msrb.mxu1 %v1685_v27 }
  0xb6   :  { %v469_v31 = vpop.f32.mrf.mxu2 }
  0xb7   :  { %v1648_v34 = vadd.f32 %v469_v31, %v355_v30  ;;  %v356_v35 = vpop.f32.mrf.mxu1  ;;  %v1697_v30 = vld [vmem:[%s1887_s5 + $0xb0] sm:$0xff]  ;;  %v1389_v31 = vld [vmem:[%s1887_s5 + $0x20] sm:$0xff] }
  0xb8   :  { %853 = vmatpush.bf16.msrb.mxu0 %v1389_v31  ;;  %1412 = vmatpush.bf16.msrb.mxu2 %v1389_v31 }
  0xb9   :  { %v489_v42 = vmul.f32 %v1648_v34, %v1648_v34  ;;  %v479_v47 = vadd.f32 %v478_v41, %v1648_v34  ;;  %963 = vmatpush.bf16.msrb.mxu1 %v1697_v30 }
  0xbb   :  { %v277_v39 = vpop.f32.mrf.mxu0  ;;  %v492_v49 = vadd.f32 %v491_v46, %v489_v42  ;;  %v1387_v46 = vld [vmem:[%s1887_s5 + $0x10] sm:$0xff] }
  0xbc   :  { %v357_v43 = vadd.f32 %v356_v35, %v277_v39  ;;  %v1709_v39 = vld [vmem:[%s1887_s5 + $0xa8] sm:$0xff]  ;;  %854 = vmatpush.bf16.msrb.mxu0 %v1388_v40  ;;  %1413 = vmatpush.bf16.msrb.mxu2 %v1388_v40 }
  0xbd   :  { %964 = vmatpush.bf16.msrb.mxu1 %v1709_v39 }
  0xbe   :  { %v471_v45 = vpop.f32.mrf.mxu2 }
  0xbf   :  { %v1659_v48 = vadd.f32 %v471_v45, %v357_v43  ;;  %v1398_v43 = vld [vmem:[%s1887_s5 + $0x68] sm:$0xff]  ;;  %v1721_v45 = vld [vmem:[%s1887_s5 + $0xa0] sm:$0xff] }
  0xc0   :  { %773 = vmatpush.bf16.msra.mxu3 %v1398_v43  ;;  %855 = vmatpush.bf16.msrb.mxu0 %v1387_v46 }
  0xc1   :  { %v480_v50 = vadd.f32 %v479_v47, %v1659_v48  ;;  %v490_v51 = vmul.f32 %v1659_v48, %v1659_v48  ;;  %965 = vmatpush.bf16.msrb.mxu1 %v1721_v45  ;;  %1414 = vmatpush.bf16.msrb.mxu2 %v1387_v46 }
  0xc3   :  { %v481_v52 = vrot.slane %v480_v50, 4  ;;  %v493_v53 = vadd.f32 %v492_v49, %v490_v51  ;;  %v1733_v51 = vld [vmem:[%s1887_s5 + $0x98] sm:$0xff] }
  0xc5   :  { %v494_v54 = vrot.slane %v493_v53, 4  ;;  %v482_v55 = vadd.f32 %v481_v52, %v480_v50  ;;  %v1397_v50 = vld [vmem:[%s1887_s5 + $0x60] sm:$0xff]  ;;  %v1386_v52 = vld [vmem:[%s1887_s5 + $0x8] sm:$0xff]  ;;  %966 = vmatpush.bf16.msrb.mxu1 %v1733_v51 }
  0xc6   :  { %774 = vmatpush.bf16.msra.mxu3 %v1397_v50  ;;  %856 = vmatpush.bf16.msrb.mxu0 %v1386_v52  ;;  %v621_v50 = vld [vmem:[#allocation2 + $0xc] sm:$0xf] }
  0xc7   :  { %v483_v56 = vrot.slane %v482_v55, 2  ;;  %v495_v57 = vadd.f32 %v494_v54, %v493_v53  ;;  %v528_v53 = vld [vmem:[%s1888_s2] sm:$0x1]  ;;  %1415 = vmatpush.bf16.msrb.mxu2 %v1386_v52 }
  0xc9   :  { %v484_v58 = vadd.f32 %v483_v56, %v482_v55  ;;  %v496_v59 = vrot.slane %v495_v57, 2  ;;  %v1396_v55 = vld [vmem:[%s1887_s5 + $0x58] sm:$0xff]  ;;  %v1748_v56 = vld [vmem:[%s1887_s5 + $0x90] sm:$0xff] }
  0xca   :  { %775 = vmatpush.bf16.msra.mxu3 %v1396_v55  ;;  %967 = vmatpush.bf16.msrb.mxu1 %v1748_v56 }
  0xcb   :  { %v485_v60 = vrot.slane %v484_v58, 1  ;;  %v497_v62 = vadd.f32 %v496_v59, %v495_v57 }
  0xcd   :  { %v486_v61 = vadd.f32 %v485_v60, %v484_v58  ;;  %v498_v63 = vrot.slane %v497_v62, 1  ;;  %v1385_v58 = vld [vmem:[%s1887_s5] sm:$0xff] }
  0xce   :  { %v541_v60 = vld [vmem:[%s1889_s3] sm:$0x1]  ;;  %857 = vmatpush.bf16.msrb.mxu0 %v1385_v58  ;;  %1416 = vmatpush.bf16.msrb.mxu2 %v1385_v58 }
  0xcf   :  { %500 = vrot.lane.b32.xlu0 %v486_v61, %s1435_s1  ;;  %v499_v0 = vadd.f32 %v498_v63, %v497_v62  ;;  %v1395_v63 = vld [vmem:[%s1887_s5 + $0x50] sm:$0xff] }
  0xd0   :  { %776 = vmatpush.bf16.msra.mxu3 %v1395_v63 }
  0xd7   :  { %513 = vrot.lane.b32.xlu0 %v499_v0, %s1435_s1 }
 0x141   :  { %v501_v1 = vpop.permute.xlu0 %500 }
 0x142   :  { %v502_v2 = vadd.f32 %v501_v1, %v486_v61  ;;  %v1764_v1 = vld [vmem:[%s1887_s5 + $0x88] sm:$0xff] }
 0x143   :  { %968 = vmatpush.bf16.msrb.mxu1 %v1764_v1 }
 0x144   :  { %503 = vrot.lane.b32.xlu1 %v502_v2, %s1436_s17 }
 0x149   :  { %v514_v3 = vpop.permute.xlu0 %513 }
 0x14a   :  { %v515_v4 = vadd.f32 %v514_v3, %v499_v0 }
 0x14c   :  { %516 = vrot.lane.b32.xlu1 %v515_v4, %s1436_s17 }
 0x1b6   :  { %v504_v5 = vpop.permute.xlu1 %503 }
 0x1b7   :  { %v505_v6 = vadd.f32 %v504_v5, %v502_v2 }
 0x1b9   :  { %506 = vrot.lane.b32.xlu2 %v505_v6, %s1437_s18 }
 0x1be   :  { %v517_v7 = vpop.permute.xlu1 %516 }
 0x1bf   :  { %v518_v8 = vadd.f32 %v517_v7, %v515_v4  ;;  %v1394_v7 = vld [vmem:[%s1887_s5 + $0x48] sm:$0xff] }
 0x1c0   :  { %777 = vmatpush.bf16.msra.mxu3 %v1394_v7 }
 0x1c1   :  { %519 = vrot.lane.b32.xlu2 %v518_v8, %s1437_s18 }
 0x213   :  { %v507_v10 = vpop.permute.xlu2 %506 }
 0x214   :  { %v508_v11 = vadd.f32 %v507_v10, %v505_v6 }
 0x216   :  { %509 = vrot.lane.b32.xlu0 %v508_v11, %s1438_s19 }
 0x21b   :  { %v520_v13 = vpop.permute.xlu2 %519 }
 0x21c   :  { %v521_v14 = vadd.f32 %v520_v13, %v518_v8  ;;  %v1777_v8 = vld [vmem:[%s1887_s5 + $0x80] sm:$0xff] }
 0x21d   :  { %969 = vmatpush.bf16.msrb.mxu1 %v1777_v8 }
 0x21e   :  { %522 = vrot.lane.b32.xlu1 %v521_v14, %s1438_s19 }
 0x288   :  { %v510_v15 = vpop.permute.xlu0 %509 }
 0x289   :  { %v511_v17 = vadd.f32 %v510_v15, %v508_v11  ;;  %v1393_v11 = vld [vmem:[%s1887_s5 + $0x40] sm:$0xff] }
 0x28a   :  { %778 = vmatpush.bf16.msra.mxu3 %v1393_v11 }
 0x28b   :  { %v1672_v18 = vmul.f32 0.001953125, %v511_v17 }
 0x28d   :  { %v526_v22 = vmul.f32 %v1672_v18, %v1672_v18 }
 0x28e   :  { %1417 = vmatpush.bf16.msrb.mxu3 %v1685_v27 }
 0x290   :  { %v523_v20 = vpop.permute.xlu1 %522 }
 0x291   :  { %v524_v21 = vadd.f32 %v523_v20, %v521_v14 }
 0x292   :  { %1418 = vmatpush.bf16.msrb.mxu3 %v1697_v30 }
 0x293   :  { %v525_v23 = vmul.f32 0.001953125, %v524_v21 }
 0x295   :  { %v527_v25 = vsub.f32 %v525_v23, %v526_v22 }
 0x296   :  { %1419 = vmatpush.bf16.msrb.mxu3 %v1709_v39 }
 0x297   :  { %v529_v26 = vadd.f32 1e-05, %v527_v25 }
 0x299   :  { %1429 = vrsqrt.f32 %v529_v26  ;;  %vm536_vm0 = vweird.f32 %v529_v26 }
 0x29a   :  { %1420 = vmatpush.bf16.msrb.mxu3 %v1721_v45 }
 0x29e   :  { %1421 = vmatpush.bf16.msrb.mxu3 %v1733_v51 }
 0x29f   :  { %v1430_v35 = vpop.eup %1429 }
 0x2a0   :  { %v531_v41 = vmul.f32 %v1430_v35, %v529_v26  ;;  %vm537_vm15 = vweird.f32 %v1430_v35 }
 0x2a1   :  { %vm538_vm1 = vmor %vm536_vm0, %vm537_vm15 }
 0x2a2   :  { %v532_v42 = vmul.f32 %v1430_v35, %v531_v41  ;;  %1422 = vmatpush.bf16.msrb.mxu3 %v1748_v56 }
 0x2a4   :  { %v533_v47 = vmul.f32 0.5, %v532_v42  ;;  %v618_v42 = vld [vmem:[#allocation2 + $0x8] sm:$0x1] }
 0x2a6   :  { %v534_v49 = vsub.f32 1.5, %v533_v47  ;;  %1423 = vmatpush.bf16.msrb.mxu3 %v1764_v1 }
 0x2a8   :  { %v535_v54 = vmul.f32 %v1430_v35, %v534_v49 }
 0x2aa   :  { %v539_v57 = vsel %vm538_vm1, %v1430_v35, %v535_v54  ;;  %1424 = vmatpush.bf16.msrb.mxu3 %v1777_v8 }
 0x2ab   :  { %v540_v59 = vmul.f32 %v539_v57, %v528_v53 }
 0x2ad   :  { %v542_v61 = vmul.f32 %v540_v59, %v1672_v18  ;;  %v545_v62 = vperm.slane %v540_v59, 0 }
 0x2af   :  { %v543_v0 = vsub.f32 %v541_v60, %v542_v61  ;;  %v547_v2 = vmul.f32 %v545_v62, %v1646_v33  ;;  %v548_v3 = vmul.f32 %v545_v62, %v1644_v32  ;;  %v549_v4 = vmul.f32 %v545_v62, %v1648_v34  ;;  %v625_v60 = vld [vmem:[#allocation2 + $0x14] sm:$0x1] }
 0x2b0   :  { %v550_v5 = vmul.f32 %v545_v62, %v1659_v48  ;;  %v562_v32 = vstv %s1890_s4 }
 0x2b1   :  { %v552_v6 = vperm.slane %v543_v0, 0 }
 0x2b3   :  { %v554_v33 = vadd.f32 %v552_v6, %v547_v2  ;;  %v555_v34 = vadd.f32 %v552_v6, %v548_v3  ;;  %v556_v48 = vadd.f32 %v552_v6, %v549_v4  ;;  %v557_v10 = vadd.f32 %v552_v6, %v550_v5 }
 0x2b5   :  { %vm558_vm2 = vcmp.ge.f32.partialorder %v554_v33, 0.0  ;;  %vm559_vm4 = vcmp.ge.f32.partialorder %v555_v34, 0.0  ;;  %vm560_vm5 = vcmp.ge.f32.partialorder %v556_v48, 0.0  ;;  %vm561_vm6 = vcmp.ge.f32.partialorder %v557_v10, 0.0 }
 0x2b6   :  { %v563_v13 = vmul.f32 %v562_v32, %v554_v33  ;;  %v564_v14 = vmul.f32 %v562_v32, %v555_v34  ;;  %v565_v15 = vmul.f32 %v562_v32, %v556_v48  ;;  %v566_v17 = vmul.f32 %v562_v32, %v557_v10 }
 0x2b8   :  { %v567_v18 = vsel %vm558_vm2, %v554_v33, %v563_v13  ;;  %v568_v19 = vsel %vm559_vm4, %v555_v34, %v564_v14  ;;  %v569_v20 = vsel %vm560_vm5, %v556_v48, %v565_v15  ;;  %v570_v21 = vsel %vm561_vm6, %v557_v10, %v566_v17 }
 0x2b9   :  { %v571_v22 = vpack.c.bf16 %v567_v18, %v567_v18  ;;  %v572_v23 = vpack.c.bf16 %v568_v19, %v568_v19  ;;  %v573_v24 = vpack.c.bf16 %v569_v20, %v569_v20  ;;  %v574_v25 = vpack.c.bf16 %v570_v21, %v570_v21 }
 0x2bb   :  { %v576_v26 = vshrl.u32 %v571_v22, 16  ;;  %v584_v28 = vshrl.u32 %v572_v23, 16  ;;  %v593_v29 = vshrl.u32 %v573_v24, 16  ;;  %v601_v31 = vshrl.u32 %v574_v25, 16 }
 0x2bc   :  { %v579_v36 = vshll.u32 %v571_v22, 16  ;;  %v587_v41 = vshll.u32 %v572_v23, 16  ;;  %v596_v46 = vshll.u32 %v573_v24, 16  ;;  %v604_v49 = vshll.u32 %v574_v25, 16 }
 0x2bd   :  { %v578_v35 = vrot.slane %v576_v26, 7  ;;  %v586_v40 = vrot.slane %v584_v28, 7  ;;  %v595_v43 = vrot.slane %v593_v29, 7  ;;  %v603_v47 = vrot.slane %v601_v31, 7 }
 0x2bf   :  { %v581_v52 = vor.u32 %v579_v36, %v578_v35  ;;  %v582_v53 = vrot.slane %v578_v35, 4  ;;  %v589_v54 = vor.u32 %v587_v41, %v586_v40  ;;  %v591_v27 = vrot.slane %v586_v40, 4 }
 0x2c0   :  { %v598_v55 = vor.u32 %v596_v46, %v595_v43  ;;  %v599_v57 = vrot.slane %v595_v43, 4  ;;  %v606_v58 = vor.u32 %v604_v49, %v603_v47  ;;  %v608_v59 = vrot.slane %v603_v47, 4 }
 0x2c1   :  { %v590_v61 = vsel %vm1560_vm7, %v582_v53, %v589_v54  ;;  %v615_v62 = vsel %vm1569_vm8, %v581_v52, %v1609_v9  ;;  %v619_v30 = vsel %vm1519_vm3, %v591_v27, %v618_v42 }
 0x2c2   :  { %v622_v63 = vsel %vm1569_vm8, %v598_v55, %v621_v50  ;;  %616 = vst [vmem:[#allocation2] sm:$0xf] %v615_v62  ;;  %v607_v0 = vsel %vm1560_vm7, %v599_v57, %v606_v58  ;;  %v626_v2 = vsel %vm1519_vm3, %v608_v59, %v625_v60 }
 0x2c3   :  { %617 = vst [vmem:[#allocation2 + $0x4] sm:$0xf] %v590_v61 }
 0x2c4   :  { %620 = vst [vmem:[#allocation2 + $0x8] sm:$0x1] %v619_v30 }
 0x2c5   :  { %623 = vst [vmem:[#allocation2 + $0xc] sm:$0xf] %v622_v63 }
 0x2c6   :  { %624 = vst [vmem:[#allocation2 + $0x10] sm:$0xf] %v607_v0 }
 0x2c7   :  { %627 = vst [vmem:[#allocation2 + $0x14] sm:$0x1] %v626_v2 }
 0x2c9   :  { %v869_v9 = vld [vmem:[#allocation2] sm:$0xe] }
 0x2ca   :  { %v628_v3 = vld [vmem:[#allocation2] sm:$0xf]  ;;  %v629_v4 = vld [vmem:[#allocation2 + $0x4] sm:$0xf]  ;;  %v1307_v5 = vrot.slane %v869_v9, 9 }
 0x2cb   :  { %v1383_v44 = vld [vmem:[#allocation2] sm:$0xff]  ;;  %v651_v6 = vshrl.u32 %v628_v3, 16  ;;  %v654_v39 = vshll.u32 %v628_v3, 16  ;;  %v648_v37 = vld [vmem:[#allocation2 + $0x8] sm:$0x1]  ;;  %v877_v7 = vrot.slane %v629_v4, 5 }
 0x2cc   :  { %v660_v32 = vshll.u32 %v629_v4, 16  ;;  %v664_v12 = vshrl.u32 %v629_v4, 16  ;;  %858 = vmatmul.bf16.vlgmr.msrb.gmra.mxu0 %v1383_v44  ;;  %v880_v33 = vrot.slane %v648_v37, 5  ;;  %v670_v10 = vshll.u32 %v648_v37, 16  ;;  %v630_v45 = vld [vmem:[#allocation2 + $0xc] sm:$0xf] }
 0x2cd   :  { %v653_v34 = vrot.slane %v651_v6, 4  ;;  %v656_v48 = vrot.slane %v654_v39, 5  ;;  %v1384_v11 = vld [vmem:[#allocation2 + $0xc] sm:$0xff]  ;;  %v878_v13 = vsel %vm1618_vm13, %v1307_v5, %v877_v7  ;;  %v879_v14 = vrot.slane %v877_v7, 4 }
 0x2ce   :  { %v662_v15 = vrot.slane %v660_v32, 5  ;;  %v666_v17 = vrot.slane %v664_v12, 4  ;;  %v631_v18 = vld [vmem:[#allocation2 + $0x10] sm:$0xf]  ;;  %v675_v51 = vshrl.u32 %v630_v45, 16  ;;  %863 = vmatmul.bf16.vlgmr.msrb.gmra.mxu2 %v1384_v11  ;;  %v678_v22 = vshll.u32 %v630_v45, 16 }
 0x2cf   :  { %v657_v19 = vor.u32 %v656_v48, %v653_v34  ;;  %v881_v20 = vsel %vm1618_vm13, %v879_v14, %v880_v33  ;;  %v684_v23 = vshll.u32 %v631_v18, 16  ;;  %v906_v24 = vunpack.c.l.b16 %v878_v13  ;;  %v649_v50 = vld [vmem:[#allocation2 + $0x14] sm:$0x1]  ;;  %v870_v30 = vld [vmem:[#allocation2 + $0xc] sm:$0xe] }
 0x2d0   :  { %v667_v21 = vor.u32 %v666_v17, %v662_v15  ;;  %v907_v25 = vunpack.c.l.b16 %v881_v20  ;;  %v688_v28 = vshrl.u32 %v631_v18, 16  ;;  %v672_v31 = vrot.slane %v670_v10, 5 }
 0x2d1   :  { %v658_v26 = vrot.slane %v657_v19, 4  ;;  %v677_v40 = vrot.slane %v675_v51, 4  ;;  %v680_v41 = vrot.slane %v678_v22, 5  ;;  %v686_v43 = vrot.slane %v684_v23, 5 }
 0x2d2   :  { %v668_v29 = vrot.slane %v667_v21, 4  ;;  %v910_v35 = vpack.c.b16 %v907_v25, %v906_v24  ;;  %v690_v46 = vrot.slane %v688_v28, 4  ;;  %v694_v54 = vshll.u32 %v649_v50, 16 }
 0x2d3   :  { %v663_v36 = vsel %vm1626_vm14, %v658_v26, %v662_v15  ;;  %v681_v52 = vor.u32 %v680_v41, %v677_v40  ;;  %v884_v62 = vrot.slane %v631_v18, 5  ;;  %v1308_v63 = vrot.slane %v870_v30, 9 }
 0x2d4   :  { %v673_v56 = vsel %vm1626_vm14, %v668_v29, %v672_v31  ;;  %v715_v42 = vunpack.c.l.b16 %v663_v36  ;;  %970 = vmatmul.bf16.vlgmr.msrb.gmra.mxu1 %v910_v35  ;;  %v691_v53 = vor.u32 %v690_v46, %v686_v43  ;;  %v696_v57 = vrot.slane %v694_v54, 5 }
 0x2d5   :  { %v716_v47 = vunpack.c.l.b16 %v673_v56  ;;  %v682_v27 = vrot.slane %v681_v52, 4  ;;  %v886_v8 = vrot.slane %v884_v62, 4  ;;  %v887_v0 = vrot.slane %v649_v50, 5 }
 0x2d6   :  { %v692_v55 = vrot.slane %v691_v53, 4  ;;  %v885_v9 = vsel %vm1618_vm13, %v1308_v63, %v884_v62 }
 0x2d7   :  { %v719_v49 = vpack.c.b16 %v716_v47, %v715_v42  ;;  %v687_v1 = vsel %vm1626_vm14, %v682_v27, %v686_v43  ;;  %v888_v2 = vsel %vm1618_vm13, %v886_v8, %v887_v0  ;;  %v908_v44 = vunpack.c.l.b16 %v885_v9 }
 0x2d8   :  { %v697_v58 = vsel %vm1626_vm14, %v692_v55, %v696_v57  ;;  %v717_v59 = vunpack.c.l.b16 %v687_v1  ;;  %v909_v3 = vunpack.c.l.b16 %v888_v2 }
 0x2d9   :  { %779 = vmatmul.bf16.vlgmr.msra.gmra.mxu3 %v719_v49  ;;  %v718_v60 = vunpack.c.l.b16 %v697_v58 }
 0x2da   :  { %v911_v4 = vpack.c.b16 %v909_v3, %v908_v44 }
 0x2db   :  { %v720_v61 = vpack.c.b16 %v718_v60, %v717_v59 }
 0x2e9   :  { %784 = vmatmul.bf16.gmra.mxu3 %v720_v61 }
 0x2f9   :  { %975 = vmatmul.bf16.vlgmr.msrb.gmra.mxu3 %v911_v4 }
 0x349   :  { %v859_v39 = vpop.f32.mrf.mxu0 }
 0x351   :  { %v971_v37 = vpop.f32.mrf.mxu1  ;;  %v864_v32 = vpop.f32.mrf.mxu2 }
 0x352   :  { %v861_v12 = vpop.f32.mrf.mxu0 }
 0x359   :  { %v973_v48 = vpop.f32.mrf.mxu1  ;;  %v866_v15 = vpop.f32.mrf.mxu2 }
 0x35c   :  { %v780_v38 = vpop.f32.mrf.mxu3 }
 0x35d   :  { %v860_v34 = vadd.f32 %v859_v39, %v780_v38 }
 0x35f   :  { %v1825_v11 = vadd.f32 %v971_v37, %v860_v34  ;;  %v1035_v37 = vld [vmem:[%s1891_s6] sm:$0x1] }
 0x361   :  { %v994_v17 = vmul.f32 %v1825_v11, %v1825_v11 }
 0x364   :  { %v782_v5 = vpop.f32.mrf.mxu3 }
 0x365   :  { %v862_v33 = vadd.f32 %v861_v12, %v782_v5 }
 0x367   :  { %v1823_v45 = vadd.f32 %v973_v48, %v862_v33  ;;  %v1048_v33 = vld [vmem:[%s1892_s7] sm:$0x1] }
 0x369   :  { %v995_v14 = vmul.f32 %v1823_v45, %v1823_v45  ;;  %v985_v19 = vadd.f32 %v1823_v45, %v1825_v11 }
 0x36b   :  { %v998_v22 = vadd.f32 %v995_v14, %v994_v17 }
 0x36c   :  { %v785_v6 = vpop.f32.mrf.mxu3 }
 0x36d   :  { %v865_v16 = vadd.f32 %v864_v32, %v785_v6 }
 0x374   :  { %v787_v7 = vpop.f32.mrf.mxu3 }
 0x375   :  { %v867_v18 = vadd.f32 %v866_v15, %v787_v7 }
 0x37c   :  { %v976_v10 = vpop.f32.mrf.mxu3 }
 0x37d   :  { %v1827_v13 = vadd.f32 %v976_v10, %v865_v16 }
 0x37f   :  { %v996_v51 = vmul.f32 %v1827_v13, %v1827_v13  ;;  %v986_v21 = vadd.f32 %v985_v19, %v1827_v13  ;;  %v1065_v19 = vld [vmem:[%s1886_s0] sm:$0xff] }
 0x381   :  { %v999_v24 = vadd.f32 %v998_v22, %v996_v51  ;;  %v1066_v51 = vld [vmem:[%s1886_s0 + $0x8] sm:$0xff] }
 0x384   :  { %v978_v20 = vpop.f32.mrf.mxu3 }
 0x385   :  { %v1838_v23 = vadd.f32 %v978_v20, %v867_v18 }
 0x387   :  { %v987_v25 = vadd.f32 %v986_v21, %v1838_v23  ;;  %v997_v26 = vmul.f32 %v1838_v23, %v1838_v23 }
 0x389   :  { %v988_v28 = vrot.slane %v987_v25, 4  ;;  %v1000_v29 = vadd.f32 %v999_v24, %v997_v26 }
 0x38b   :  { %v989_v31 = vadd.f32 %v988_v28, %v987_v25  ;;  %v1001_v35 = vrot.slane %v1000_v29, 4 }
 0x38d   :  { %v990_v36 = vrot.slane %v989_v31, 2  ;;  %v1002_v40 = vadd.f32 %v1001_v35, %v1000_v29 }
 0x38f   :  { %v991_v41 = vadd.f32 %v990_v36, %v989_v31  ;;  %v1003_v56 = vrot.slane %v1002_v40, 2 }
 0x391   :  { %v992_v42 = vrot.slane %v991_v41, 1  ;;  %v1004_v43 = vadd.f32 %v1003_v56, %v1002_v40 }
 0x393   :  { %v993_v46 = vadd.f32 %v992_v42, %v991_v41  ;;  %v1005_v47 = vrot.slane %v1004_v43, 1 }
 0x395   :  { %1007 = vrot.lane.b32.xlu2 %v993_v46, %s1435_s1  ;;  %v1006_v49 = vadd.f32 %v1005_v47, %v1004_v43 }
 0x397   :  { %1020 = vrot.lane.b32.xlu0 %v1006_v49, %s1435_s1 }
 0x3ef   :  { %v1008_v50 = vpop.permute.xlu2 %1007 }
 0x3f0   :  { %v1009_v52 = vadd.f32 %v1008_v50, %v993_v46 }
 0x3f2   :  { %1010 = vrot.lane.b32.xlu1 %v1009_v52, %s1436_s17 }
 0x409   :  { %v1021_v53 = vpop.permute.xlu0 %1020 }
 0x40a   :  { %v1022_v54 = vadd.f32 %v1021_v53, %v1006_v49 }
 0x40c   :  { %1023 = vrot.lane.b32.xlu2 %v1022_v54, %s1436_s17 }
 0x464   :  { %v1011_v27 = vpop.permute.xlu1 %1010 }
 0x465   :  { %v1012_v55 = vadd.f32 %v1011_v27, %v1009_v52 }
 0x466   :  { %v1024_v57 = vpop.permute.xlu2 %1023 }
 0x467   :  { %v1025_v1 = vadd.f32 %v1024_v57, %v1022_v54  ;;  %1013 = vrot.lane.b32.xlu0 %v1012_v55, %s1437_s18 }
 0x469   :  { %1026 = vrot.lane.b32.xlu1 %v1025_v1, %s1437_s18 }
 0x4d9   :  { %v1014_v58 = vpop.permute.xlu0 %1013 }
 0x4da   :  { %v1015_v59 = vadd.f32 %v1014_v58, %v1012_v55 }
 0x4db   :  { %v1027_v60 = vpop.permute.xlu1 %1026 }
 0x4dc   :  { %v1028_v61 = vadd.f32 %v1027_v60, %v1025_v1  ;;  %1016 = vrot.lane.b32.xlu2 %v1015_v59, %s1438_s19 }
 0x4de   :  { %1029 = vrot.lane.b32.xlu0 %v1028_v61, %s1438_s19 }
 0x536   :  { %v1017_v62 = vpop.permute.xlu2 %1016 }
 0x537   :  { %v1018_v30 = vadd.f32 %v1017_v62, %v1015_v59 }
 0x539   :  { %v1019_v8 = vmul.f32 0.001953125, %v1018_v30 }
 0x53b   :  { %v1033_v2 = vmul.f32 %v1019_v8, %v1019_v8 }
 0x550   :  { %v1030_v63 = vpop.permute.xlu0 %1029 }
 0x551   :  { %v1031_v0 = vadd.f32 %v1030_v63, %v1028_v61 }
 0x553   :  { %v1032_v9 = vmul.f32 0.001953125, %v1031_v0 }
 0x555   :  { %v1034_v3 = vsub.f32 %v1032_v9, %v1033_v2 }
 0x557   :  { %v1036_v44 = vadd.f32 1e-05, %v1034_v3 }
 0x559   :  { %1431 = vrsqrt.f32 %v1036_v44  ;;  %vm1043_vm7 = vweird.f32 %v1036_v44 }
 0x55f   :  { %v1432_v4 = vpop.eup %1431 }
 0x560   :  { %v1038_v38 = vmul.f32 %v1432_v4, %v1036_v44  ;;  %vm1044_vm3 = vweird.f32 %v1432_v4 }
 0x561   :  { %vm1045_vm8 = vmor %vm1043_vm7, %vm1044_vm3 }
 0x562   :  { %v1039_v5 = vmul.f32 %v1432_v4, %v1038_v38 }
 0x564   :  { %v1040_v6 = vmul.f32 0.5, %v1039_v5 }
 0x566   :  { %v1041_v39 = vsub.f32 1.5, %v1040_v6 }
 0x568   :  { %v1042_v7 = vmul.f32 %v1432_v4, %v1041_v39 }
 0x56a   :  { %v1046_v32 = vsel %vm1045_vm8, %v1432_v4, %v1042_v7 }
 0x56b   :  { %v1047_v12 = vmul.f32 %v1046_v32, %v1035_v37 }
 0x56d   :  { %v1049_v34 = vmul.f32 %v1047_v12, %v1019_v8  ;;  %v1052_v48 = vperm.slane %v1047_v12, 0 }
 0x56f   :  { %v1050_v10 = vsub.f32 %v1048_v33, %v1049_v34  ;;  %v1054_v16 = vmul.f32 %v1052_v48, %v1825_v11  ;;  %v1055_v14 = vmul.f32 %v1052_v48, %v1823_v45  ;;  %v1056_v15 = vmul.f32 %v1052_v48, %v1827_v13  ;;  %v1433_v45 = vld [vmem:[%s1886_s0 + $0x10] sm:$0xff] }
 0x570   :  { %v1057_v17 = vmul.f32 %v1052_v48, %v1838_v23  ;;  %v1434_v23 = vld [vmem:[%s1886_s0 + $0x18] sm:$0xff] }
 0x571   :  { %v1059_v18 = vperm.slane %v1050_v10, 0 }
 0x573   :  { %v1061_v20 = vadd.f32 %v1059_v18, %v1054_v16  ;;  %v1062_v21 = vadd.f32 %v1059_v18, %v1055_v14  ;;  %v1063_v22 = vadd.f32 %v1059_v18, %v1056_v15  ;;  %v1064_v24 = vadd.f32 %v1059_v18, %v1057_v17 }
 0x575   :  { %v1069_v11 = vadd.f32 %v1065_v19, %v1061_v20  ;;  %v1070_v25 = vadd.f32 %v1066_v51, %v1062_v21  ;;  %v1071_v13 = vadd.f32 %v1433_v45, %v1063_v22  ;;  %v1072_v26 = vadd.f32 %v1434_v23, %v1064_v24 }
 0x577   :  { %1073 = vst [vmem:[%s1893_s8] sm:$0xff] %v1069_v11 }
 0x578   :  { %1074 = vst [vmem:[%s1893_s8 + $0x8] sm:$0xff] %v1070_v25 }
 0x579   :  { %1075 = vst [vmem:[%s1893_s8 + $0x10] sm:$0xff] %v1071_v13 }
 0x57a   :  { %1076 = vst [vmem:[%s1893_s8 + $0x18] sm:$0xff] %v1072_v26 }

</bundles_post_ra>
